<compile_context>
chip_gen: v6e
topology: v6e:2x2x1
jax: 0.10.0
libtpu: 0.0.40
codegen_flags: <defaults>
</compile_context>

<pallas_src>
import functools

import jax
import jax.numpy as jnp
from jax import lax
from jax.experimental import pallas as pl
from jax.experimental.pallas import tpu as pltpu


def _round_up(x, m):
    return ((x + m - 1) // m) * m


def _round_down(x, m):
    return (x // m) * m


def _vmem_capacity_bytes():
    """Per-core VMEM capacity; falls back to the smallest generation (v7x, 64 MiB)."""
    try:
        info = pltpu.get_tpu_info()
        cap = getattr(info, "vmem_capacity_bytes", None)
        if cap:
            return int(cap)
    except Exception:
        pass
    return 64 * 1024 * 1024


# ---------------------------------------------------------------------------
# Kernels
# ---------------------------------------------------------------------------
def _ls_kernel_full(pred_ref, tgt_ref, out_ref, *, total_mass, conf_minus_sv,
                    smooth_val, n_valid, block_n):
    """Whole class row resident in VMEM (single class tile)."""
    i = pl.program_id(0)

    x = pred_ref[...].astype(jnp.float32)            # (bn, C)
    tgt = tgt_ref[...]                               # (bn, 1) int32

    m = jnp.max(x, axis=-1, keepdims=True)
    lse = m + jnp.log(jnp.sum(jnp.exp(x - m), axis=-1, keepdims=True))
    sum_x = jnp.sum(x, axis=-1, keepdims=True)
    col = lax.broadcasted_iota(jnp.int32, x.shape, 1)
    x_t = jnp.sum(jnp.where(col == tgt, x, 0.0), axis=-1, keepdims=True)

    # loss = total_mass*lse - conf*x_t - sv*(sum_x - x_t)
    per_row = total_mass * lse - conf_minus_sv * x_t - smooth_val * sum_x

    # Mask rows that only exist because the last row tile over-covers N
    # (no wrapper-side padding; garbage rows may be inf/NaN -> select 0).
    row = lax.broadcasted_iota(jnp.int32, (block_n, 1), 0) + i * block_n
    per_row = jnp.where(row < n_valid, per_row, 0.0)

    # Per-tile partial sum splatted into a full lane-dense (1, 8, 128) block
    # (unmasked store); the wrapper reads element [:, 0, 0].
    out_ref[...] = jnp.full(out_ref.shape, jnp.sum(per_row), dtype=out_ref.dtype)


def _ls_kernel_tiled(pred_ref, tgt_ref, out_ref, m_ref, l_ref, lin_ref, *,
                     total_mass, conf_minus_sv, smooth_val, n_valid, n_classes,
                     block_n, block_c):
    """Class-tiled path: online max/LSE + linear-term accumulators across class tiles."""
    i = pl.program_id(0)
    k = pl.program_id(1)

    @pl.when(k == 0)
    def _():
        m_ref[...] = jnp.full_like(m_ref, -jnp.inf)
        l_ref[...] = jnp.zeros_like(l_ref)
        lin_ref[...] = jnp.zeros_like(lin_ref)

    x = pred_ref[...].astype(jnp.float32)            # (bn, bc)
    tgt = tgt_ref[...]                               # (bn, 1) int32

    col = lax.broadcasted_iota(jnp.int32, x.shape, 1) + k * block_c
    valid_col = col < n_classes                      # last class tile may over-cover C
    x_neg = jnp.where(valid_col, x, -jnp.inf)
    x_zero = jnp.where(valid_col, x, 0.0)

    # Online log-sum-exp.
    m_prev = m_ref[...]
    m_new = jnp.maximum(m_prev, jnp.max(x_neg, axis=-1, keepdims=True))
    l_ref[...] = l_ref[...] * jnp.exp(m_prev - m_new) + jnp.sum(
        jnp.exp(x_neg - m_new), axis=-1, keepdims=True)
    m_ref[...] = m_new

    # Linear part: (conf - sv)*x[target] + sv*sum(x), accumulated per class tile.
    x_t = jnp.sum(jnp.where(col == tgt, x_zero, 0.0), axis=-1, keepdims=True)
    sum_x = jnp.sum(x_zero, axis=-1, keepdims=True)
    lin_ref[...] += conf_minus_sv * x_t + smooth_val * sum_x

    @pl.when(k == pl.num_programs(1) - 1)
    def _():
        per_row = total_mass * (m_ref[...] + jnp.log(l_ref[...])) - lin_ref[...]
        row = lax.broadcasted_iota(jnp.int32, (block_n, 1), 0) + i * block_n
        per_row = jnp.where(row < n_valid, per_row, 0.0)
        out_ref[...] = jnp.full(out_ref.shape, jnp.sum(per_row), dtype=out_ref.dtype)


# ---------------------------------------------------------------------------
# Tiling selection + wrapper
# ---------------------------------------------------------------------------
def _choose_tiling(N, C, itemsize, block_n, block_c):
    cap = _vmem_capacity_bytes()
    # ~40% of physical VMEM for the (double-buffered) blocks, capped/floored so
    # every generation gets a sane pipeline depth.
    block_budget = max(8 << 20, min((cap * 2) // 5, 56 << 20))

    # Keep >= 2 row tiles once N >= 256 so the "parallel" row axis can shard
    # across both TensorCores on v7x (harmless on 1-TC v5e/v6e).
    row_cap = max(128, _round_up(pl.cdiv(N, 2), 128)) if N >= 256 else N

    # Bytes per row of a double-buffered pred block plus the lane-padded
    # (block_n, 1) int32 target block (1 word padded to 128 lanes = 512 B/row).
    full_row_bytes = 2 * (C * itemsize + 512)
    rows_full = block_budget // full_row_bytes

    if block_c is not None:
        use_tiling = block_c < C
    else:
        use_tiling = rows_full < min(N, 256)

    if not use_tiling:
        block_c = C
        if block_n is None:
            bn = min(rows_full, row_cap)
            block_n = N if bn >= N else max(128, _round_down(bn, 128))
    else:
        if block_n is None:
            block_n = min(256, row_cap) if N >= 256 else N
        if block_c is None:
            fixed = (2 + 3) * block_n * 512 + 2 * 8 * 128 * 4
            avail = max(block_budget - fixed, 2 * block_n * 128 * itemsize)
            block_c = max(128, _round_down(avail // (2 * block_n * itemsize), 128))
        if block_c >= C:
            block_c = C
            use_tiling = False

    block_n = min(block_n, N)
    return block_n, block_c, use_tiling, cap


def label_smoothing_loss(pred, target, *, classes, smoothing=0.1,
                         block_n=None, block_c=None):
    """Label-smoothing CE loss. pred: (N, C) f32/bf16 logits, target: (N,) or (N,1) ints.

    Returns a scalar f32 identical to PyTorch LabelSmoothingLoss.forward.
    Pass bf16 logits as bf16 (do not pre-upcast): the kernel is HBM-read bound and
    upcasts to f32 internally for the log-sum-exp.
    """
    N, C = pred.shape
    confidence = 1.0 - smoothing
    smooth_val = smoothing / (classes - 1)
    # Exact even when `classes` != C (true_dist then does not sum to 1).
    total_mass = confidence + (C - 1) * smooth_val
    conf_minus_sv = confidence - smooth_val

    itemsize = jnp.dtype(pred.dtype).itemsize
    block_n, block_c, use_tiling, vmem_cap = _choose_tiling(
        N, C, itemsize, block_n, block_c)

    tgt2d = jnp.reshape(target, (N, 1)).astype(jnp.int32)
    num_row_tiles = pl.cdiv(N, block_n)

    # Explicit VMEM limit: double-buffered pred + (lane-padded) target + output
    # blocks (+ accumulator scratch when class-tiled) + headroom, clamped to
    # ~62% of this generation's VMEM (≈40 MiB on v7x, ≈80 MiB on v5e/v6e).
    blocks_bytes = (2 * block_n * block_c * itemsize + 2 * block_n * 512
                    + 2 * 8 * 128 * 4)
    if use_tiling:
        blocks_bytes += 3 * block_n * 512
    vmem_limit = int(min(max(blocks_bytes + (4 << 20), 16 << 20),
                         (vmem_cap * 5) // 8))

    if not use_tiling:
        kernel = functools.partial(
            _ls_kernel_full, total_mass=total_mass, conf_minus_sv=conf_minus_sv,
            smooth_val=smooth_val, n_valid=N, block_n=block_n)
        grid = (num_row_tiles,)
        in_specs = [pl.BlockSpec((block_n, C), lambda i: (i, 0)),
                    pl.BlockSpec((block_n, 1), lambda i: (i, 0))]
        out_specs = pl.BlockSpec((1, 8, 128), lambda i: (i, 0, 0))
        scratch_shapes = []
        dim_sem = ("parallel",)
    else:
        num_class_tiles = pl.cdiv(C, block_c)
        kernel = functools.partial(
            _ls_kernel_tiled, total_mass=total_mass, conf_minus_sv=conf_minus_sv,
            smooth_val=smooth_val, n_valid=N, n_classes=C,
            block_n=block_n, block_c=block_c)
        grid = (num_row_tiles, num_class_tiles)
        in_specs = [pl.BlockSpec((block_n, block_c), lambda i, k: (i, k)),
                    pl.BlockSpec((block_n, 1), lambda i, k: (i, 0))]
        out_specs = pl.BlockSpec((1, 8, 128), lambda i, k: (i, 0, 0))
        scratch_shapes = [pltpu.VMEM((block_n, 1), jnp.float32)] * 3
        dim_sem = ("parallel", "arbitrary")

    partial_sums = pl.pallas_call(
        kernel,
        out_shape=jax.ShapeDtypeStruct((num_row_tiles, 8, 128), jnp.float32),
        grid_spec=pltpu.PrefetchScalarGridSpec(
            num_scalar_prefetch=0,
            grid=grid,
            in_specs=in_specs,
            out_specs=out_specs,
            scratch_shapes=scratch_shapes),
        compiler_params=pltpu.CompilerParams(
            dimension_semantics=dim_sem,
            vmem_limit_bytes=vmem_limit),
    )(pred, tgt2d)

    # Cheap final reduction (one f32 per row tile) + mean over the true batch size.
    return jnp.sum(partial_sums[:, 0, 0]) / jnp.float32(N)


# ---------------------------------------------------------------------------
# Reference + demo
# ---------------------------------------------------------------------------
def _reference(pred, target, classes, smoothing=0.1):
    confidence = 1.0 - smoothing
    logp = jax.nn.log_softmax(pred.astype(jnp.float32), axis=-1)
    true_dist = jnp.full(logp.shape, smoothing / (classes - 1), dtype=logp.dtype)
    onehot = jax.nn.one_hot(jnp.reshape(target, (-1,)), logp.shape[-1], dtype=bool)
    true_dist = jnp.where(onehot, confidence, true_dist)
    return jnp.mean(jnp.sum(-true_dist * logp, axis=-1))


if __name__ == "__main__":
    key = jax.random.PRNGKey(0)
    k1, k2, k3, k4 = jax.random.split(key, 4)
    smoothing = 0.1

    # 1) Default path: whole class row per tile, single row tile.
    N, C = 20, 32
    pred = jax.random.normal(k1, (N, C), dtype=jnp.float32)
    target = jax.random.randint(k2, (N,), 0, C, dtype=jnp.int32)
    loss = jax.block_until_ready(
        label_smoothing_loss(pred, target, classes=C, smoothing=smoothing))
    ref = _reference(pred, target, C, smoothing)
    assert jnp.allclose(loss, ref, rtol=1e-5, atol=1e-5), (loss, ref)

    # 2) Multiple row tiles with a partial (masked) last tile (no padding used).
    loss_b = jax.block_until_ready(
        label_smoothing_loss(pred, target, classes=C, smoothing=smoothing, block_n=8))
    assert jnp.allclose(loss_b, ref, rtol=1e-5, atol=1e-5), (loss_b, ref)

    # 3) Class-tiled path (online-LSE accumulators + partial last class tile mask).
    N2, C2 = 24, 300
    pred2 = jax.random.normal(k3, (N2, C2), dtype=jnp.float32)
    target2 = jax.random.randint(k4, (N2,), 0, C2, dtype=jnp.int32)
    loss2 = jax.block_until_ready(
        label_smoothing_loss(pred2, target2, classes=C2, smoothing=smoothing,
                             block_c=128))
    ref2 = _reference(pred2, target2, C2, smoothing)
    assert jnp.allclose(loss2, ref2, rtol=1e-5, atol=1e-5), (loss2, ref2)

    print("KERNEL_OK")
</pallas_src>

<mosaic_0001>
module attributes {stable_mosaic.version = 11 : i64} {
  func.func @_ls_kernel_full(%arg0: i32, %arg1: memref<20x32xf32, #tpu.memory_space<vmem>>, %arg2: memref<20x1xi32, #tpu.memory_space<vmem>>, %arg3: memref<1x8x128xf32, #tpu.memory_space<vmem>>) attributes {dimension_semantics = [#tpu.dimension_semantics<parallel>], iteration_bounds = array<i64: 1>, scalar_prefetch = 0 : i64, scratch_operands = 0 : i64, tpu.core_type = #tpu.core_type<tc>, window_params = [{transform_indices = @transform_0, window_bounds = array<i64: 20, 32>}, {transform_indices = @transform_1, window_bounds = array<i64: 20, 1>}, {transform_indices = @transform_2, window_bounds = array<i64: 1, 8, 128>}]} {
    %c0 = arith.constant 0 : index
    %c0_0 = arith.constant 0 : index
    %0 = vector.load %arg1[%c0, %c0_0] : memref<20x32xf32, #tpu.memory_space<vmem>>, vector<20x32xf32>
    %c0_1 = arith.constant 0 : index
    %c0_2 = arith.constant 0 : index
    %1 = vector.load %arg2[%c0_1, %c0_2] : memref<20x1xi32, #tpu.memory_space<vmem>>, vector<20x1xi32>
    %cst = arith.constant dense<0xFF800000> : vector<20xf32>
    %2 = vector.multi_reduction <maximumf>, %0, %cst [1] : vector<20x32xf32> to vector<20xf32>
    %3 = vector.shape_cast %2 : vector<20xf32> to vector<20x1xf32>
    %4 = vector.broadcast %3 : vector<20x1xf32> to vector<20x32xf32>
    %5 = arith.subf %0, %4 : vector<20x32xf32>
    %6 = math.exp %5 : vector<20x32xf32>
    %cst_3 = arith.constant dense<0.000000e+00> : vector<20xf32>
    %7 = vector.multi_reduction <add>, %6, %cst_3 [1] : vector<20x32xf32> to vector<20xf32>
    %8 = vector.shape_cast %7 : vector<20xf32> to vector<20x1xf32>
    %9 = math.log %8 : vector<20x1xf32>
    %10 = arith.addf %3, %9 : vector<20x1xf32>
    %cst_4 = arith.constant dense<0.000000e+00> : vector<20xf32>
    %11 = vector.multi_reduction <add>, %0, %cst_4 [1] : vector<20x32xf32> to vector<20xf32>
    %12 = vector.shape_cast %11 : vector<20xf32> to vector<20x1xf32>
    %13 = tpu.iota {dimensions = array<i32: 1>} : vector<20x32xi32>
    %14 = vector.broadcast %1 : vector<20x1xi32> to vector<20x32xi32>
    %15 = arith.cmpi eq, %13, %14 : vector<20x32xi32>
    %cst_5 = arith.constant 0.000000e+00 : f32
    %16 = vector.broadcast %cst_5 : f32 to vector<20x32xf32>
    %17 = arith.select %15, %0, %16 : vector<20x32xi1>, vector<20x32xf32>
    %cst_6 = arith.constant dense<0.000000e+00> : vector<20xf32>
    %18 = vector.multi_reduction <add>, %17, %cst_6 [1] : vector<20x32xf32> to vector<20xf32>
    %19 = vector.shape_cast %18 : vector<20xf32> to vector<20x1xf32>
    %cst_7 = arith.constant 1.000000e+00 : f32
    %20 = vector.broadcast %cst_7 : f32 to vector<20x1xf32>
    %21 = arith.mulf %20, %10 : vector<20x1xf32>
    %cst_8 = arith.constant 0.896774172 : f32
    %22 = vector.broadcast %cst_8 : f32 to vector<20x1xf32>
    %23 = arith.mulf %22, %19 : vector<20x1xf32>
    %24 = arith.subf %21, %23 : vector<20x1xf32>
    %cst_9 = arith.constant 0.0032258064 : f32
    %25 = vector.broadcast %cst_9 : f32 to vector<20x1xf32>
    %26 = arith.mulf %25, %12 : vector<20x1xf32>
    %27 = arith.subf %24, %26 : vector<20x1xf32>
    %28 = tpu.iota {dimensions = array<i32: 0>} : vector<20x1xi32>
    %c20_i32 = arith.constant 20 : i32
    %29 = arith.muli %arg0, %c20_i32 : i32
    %30 = vector.broadcast %29 : i32 to vector<20x1xi32>
    %31 = arith.addi %28, %30 : vector<20x1xi32>
    %c20_i32_10 = arith.constant 20 : i32
    %32 = vector.broadcast %c20_i32_10 : i32 to vector<20x1xi32>
    %33 = arith.cmpi slt, %31, %32 : vector<20x1xi32>
    %cst_11 = arith.constant 0.000000e+00 : f32
    %34 = vector.broadcast %cst_11 : f32 to vector<20x1xf32>
    %35 = arith.select %33, %27, %34 : vector<20x1xi1>, vector<20x1xf32>
    %36 = vector.shape_cast %35 : vector<20x1xf32> to vector<1x20x1xf32>
    %cst_12 = arith.constant dense<0.000000e+00> : vector<1xf32>
    %37 = vector.multi_reduction <add>, %36, %cst_12 [1, 2] : vector<1x20x1xf32> to vector<1xf32>
    %38 = vector.shape_cast %37 : vector<1xf32> to vector<1x1x1xf32>
    %39 = vector.extract %38[0, 0, 0] : f32 from vector<1x1x1xf32>
    %40 = vector.broadcast %39 : f32 to vector<1x8x128xf32>
    %c0_13 = arith.constant 0 : index
    %c0_14 = arith.constant 0 : index
    %c0_15 = arith.constant 0 : index
    %41 = vector.load %arg3[%c0_13, %c0_14, %c0_15] : memref<1x8x128xf32, #tpu.memory_space<vmem>>, vector<1x8x128xf32>
    tpu.vector_store %arg3[%c0_13, %c0_14, %c0_15], %40 {strides = array<i32>} : memref<1x8x128xf32, #tpu.memory_space<vmem>>, vector<1x8x128xf32>,
    return
  }
  func.func @transform_0(%arg0: i32) -> (i32, i32) {
    %c0_i32 = arith.constant 0 : i32
    %c0_i32_0 = arith.constant 0 : i32
    return %arg0, %c0_i32 : i32, i32
  }
  func.func @transform_1(%arg0: i32) -> (i32, i32) {
    %c0_i32 = arith.constant 0 : i32
    %c0_i32_0 = arith.constant 0 : i32
    return %arg0, %c0_i32 : i32, i32
  }
  func.func @transform_2(%arg0: i32) -> (i32, i32, i32) {
    %c0_i32 = arith.constant 0 : i32
    %c0_i32_0 = arith.constant 0 : i32
    %c0_i32_1 = arith.constant 0 : i32
    return %arg0, %c0_i32, %c0_i32_0 : i32, i32, i32
  }
}

</mosaic_0001>

<bundles_post_ra>
// kernel: tpu_custom_call.1
= control target key start
LH: loop header
LB: loop body
LE: loop exit
PB: predicated region body
PF: predicated region fallthrough
CT: control target
= control target key end

     0   :  { %vm18_vm0 = vcmask 261120   ;;  %vm25_vm1 = vcmask 257024   ;;  %s248_s0 = inlined_call_operand.vmem [shape: f32[20,32], index: 0, kind: input, shape index: {}]   ;;  %s249_s1 = inlined_call_operand.vmem [shape: s32[20,1], index: 1, kind: input, shape index: {}]   ;;  %s250_s2 = inlined_call_operand.hbm [shape: f32[1,8,128], index: 2, kind: output, shape index: {}]  }
   0x1   :  { %v12_v0 = vld [vmem:[%s248_s0] sm:$0xff]  ;;  %v14_v1 = vld [vmem:[%s248_s0 + $0x10] sm:$0xf]  ;;  %v13_v2 = vld [vmem:[%s248_s0 + $0x8] sm:$0xff] }
   0x2   :  { %v19_v3 = vsel %vm18_vm0, %v12_v0, -inf  ;;  %v26_v4 = vsel %vm25_vm1, %v14_v1, -inf }
   0x3   :  { %20 = vmax.xlane.f32.xlu0 %v19_v3  ;;  %27 = vmax.xlane.f32.xlu1 %v26_v4 }
   0x4   :  { %7 = vsyncpa [#allocation3], 0  ;;  %v22_v5 = vsel %vm18_vm0, %v13_v2, -inf  ;;  %v190_v6 = vmov 0   ;;  %v15_v7 = vld [vmem:[%s249_s1] sm:$0xff]  ;;  %v16_v9 = vld [vmem:[%s249_s1 + $0x8] sm:$0xff]  ;;  %v65_v19 = vlaneseq }
   0x5   :  { %154 = vset.pattern.permute.xlu1 %v190_v6  ;;  %155 = vset.pattern.permute.xlu0 %v190_v6  ;;  %v17_v8 = vld [vmem:[%s249_s1 + $0x10] sm:$0xf]  ;;  %v62_v31 = vsel %vm25_vm1, %v14_v1, 0.0  ;;  %v56_v37 = vsel %vm18_vm0, %v12_v0, 0.0  ;;  %v59_v38 = vsel %vm18_vm0, %v13_v2, 0.0  ;;  %vm118_vm6 = vcmask 7168  }
   0x6   :  { %v66_v20 = vand.u32 127, %v65_v19  ;;  %v104_v47 = vshrl.u32 %v65_v19, 7  ;;  %vm122_vm7 = vcmask 3072   ;;  %s191_s1 = smov [#allocation2]  }
   0x7   :  { %23 = vmax.xlane.f32.xlu0 %v22_v5  ;;  %s142_s20 = sshll.u32 %s191_s1, 4  ;;  %s143_s20 = int_to_ptr.vmem [resolvable:$true] %s142_s20 }
   0x8   :  { %v106_v56 = vadd.s32 16, %v104_v47  ;;  %s168_s22 = scalar_lea.vmem %s143_s20, 128  ;;  %p173_p1 = scmp.lt.s32.totalorder %s143_s20, %s143_s20 }
   0x9   :  { %p169_p0 = scmp.ne.s32.totalorder %s143_s20, %s168_s22  ;;  %p174_p2 = scmp.lt.s32.totalorder %s168_s22, %s168_s22 }
   0xa   :  { %vm114_vm5 = vcmp.lt.s32.totalorder %v106_v56, 20 }
   0xb   :  { %p175_p3 = por %p174_p2, %p173_p1 }
   0xd   :  { %p176_p4 = pnand %p175_p3, %p169_p0 }
  0x14   :  { %68 = vperm.xlu1 %154, %v15_v7  }
  0x18   :  { %74 = vperm.xlu1 %154, %v17_v8  }
  0x1d   :  { %71 = vperm.xlu0 %155, %v16_v9  }
  0x8c   :  { %v21_v10 = vpop.xlane.xlu0 %20  ;;  %v228_v11 = vpop.xlane.xlu1 %27 }
  0x8d   :  { %v29_v12 = vsub.f32 %v12_v0, %v21_v10  ;;  %v31_v13 = vsub.f32 %v14_v1, %v228_v11 }
  0x8f   :  { %v32_v14 = vmul.f32 1.442695, %v29_v12  ;;  %v36_v15 = vmul.f32 1.442695, %v31_v13 }
  0x90   :  { %v231_v16 = vpop.xlane.xlu0 %23  ;;  %v69_v22 = vpop.permute.xlu1 %68 }
  0x91   :  { %156 = vpow2.f32 %v32_v14  ;;  %v30_v17 = vsub.f32 %v13_v2, %v231_v16  ;;  %vm76_vm2 = vcmp.eq.s32.totalorder %v66_v20, %v69_v22 }
  0x92   :  { %158 = vpow2.f32 %v36_v15  ;;  %v79_v28 = vsel %vm76_vm2, %v12_v0, 0.0 }
  0x93   :  { %v34_v18 = vmul.f32 1.442695, %v30_v17  ;;  %v82_v30 = vsel %vm18_vm0, %v79_v28, 0.0 }
  0x94   :  { %v75_v32 = vpop.permute.xlu1 %74 }
  0x95   :  { %160 = vpow2.f32 %v34_v18  ;;  %vm78_vm4 = vcmp.eq.s32.totalorder %v66_v20, %v75_v32 }
  0x96   :  { %v81_v35 = vsel %vm78_vm4, %v14_v1, 0.0 }
  0x97   :  { %v88_v36 = vsel %vm25_vm1, %v81_v35, 0.0 }
  0x98   :  { %v72_v25 = vpop.permute.xlu0 %71 }
  0x99   :  { %vm77_vm3 = vcmp.eq.s32.totalorder %v66_v20, %v72_v25 }
  0x9a   :  { %v80_v33 = vsel %vm77_vm3, %v13_v2, 0.0 }
  0x9b   :  { %v85_v34 = vsel %vm18_vm0, %v80_v33, 0.0 }
  0x9e   :  { %v157_v21 = vpop.eup %156 }
  0x9f   :  { %v159_v23 = vpop.eup %158  ;;  %v38_v24 = vsel %vm18_vm0, %v157_v21, 0.0 }
  0xa0   :  { %39 = vadd.xlane.f32.xlu1 %v38_v24  ;;  %v44_v26 = vsel %vm25_vm1, %v159_v23, 0.0 }
  0xa2   :  { %v161_v27 = vpop.eup %160 }
  0xa3   :  { %v41_v29 = vsel %vm18_vm0, %v161_v27, 0.0 }
  0xa4   :  { %45 = vadd.xlane.f32.xlu1 %v44_v26  ;;  %42 = vadd.xlane.f32.xlu0 %v41_v29 }
  0xa8   :  { %83 = vadd.xlane.f32.xlu1 %v82_v30  ;;  %63 = vadd.xlane.f32.xlu0 %v62_v31 }
  0xac   :  { %86 = vadd.xlane.f32.xlu1 %v85_v34 }
  0xb0   :  { %89 = vadd.xlane.f32.xlu1 %v88_v36 }
  0xb4   :  { %57 = vadd.xlane.f32.xlu1 %v56_v37 }
  0xb8   :  { %60 = vadd.xlane.f32.xlu1 %v59_v38 }
 0x129   :  { %v40_v39 = vpop.xlane.xlu1 %39 }
 0x12a   :  { %162 = vlog2.f32 %v40_v39 }
 0x12d   :  { %v46_v40 = vpop.xlane.xlu1 %45  ;;  %v43_v41 = vpop.xlane.xlu0 %42 }
 0x12e   :  { %164 = vlog2.f32 %v46_v40 }
 0x12f   :  { %166 = vlog2.f32 %v43_v41 }
 0x131   :  { %v84_v42 = vpop.xlane.xlu1 %83  ;;  %v64_v49 = vpop.xlane.xlu0 %63 }
 0x132   :  { %v91_v54 = vmul.f32 0.8967742, %v84_v42  ;;  %v99_v60 = vmul.f32 0.0032258064, %v64_v49 }
 0x135   :  { %v87_v43 = vpop.xlane.xlu1 %86 }
 0x136   :  { %v92_v63 = vmul.f32 0.8967742, %v87_v43 }
 0x137   :  { %v163_v44 = vpop.eup %162 }
 0x138   :  { %v48_v45 = vmul.f32 0.6931472, %v163_v44 }
 0x139   :  { %v90_v46 = vpop.xlane.xlu1 %89 }
 0x13a   :  { %v53_v52 = vadd.f32 %v48_v45, %v21_v10  ;;  %v93_v58 = vmul.f32 0.8967742, %v90_v46 }
 0x13b   :  { %v165_v48 = vpop.eup %164 }
 0x13c   :  { %v167_v50 = vpop.eup %166  ;;  %v52_v51 = vmul.f32 0.6931472, %v165_v48  ;;  %v94_v62 = vsub.f32 %v53_v52, %v91_v54 }
 0x13d   :  { %v50_v53 = vmul.f32 0.6931472, %v167_v50  ;;  %v58_v55 = vpop.xlane.xlu1 %57 }
 0x13e   :  { %v55_v57 = vadd.f32 %v52_v51, %v228_v11  ;;  %v97_v59 = vmul.f32 0.0032258064, %v58_v55 }
 0x13f   :  { %v54_v61 = vadd.f32 %v50_v53, %v231_v16 }
 0x140   :  { %v96_v0 = vsub.f32 %v55_v57, %v93_v58  ;;  %v100_v3 = vsub.f32 %v94_v62, %v97_v59 }
 0x141   :  { %v61_v1 = vpop.xlane.xlu1 %60  ;;  %v95_v2 = vsub.f32 %v54_v61, %v92_v63 }
 0x142   :  { %v102_v4 = vsub.f32 %v96_v0, %v99_v60  ;;  %v98_v5 = vmul.f32 0.0032258064, %v61_v1  ;;  %v119_v8 = vsel %vm118_vm6, %v100_v3, 0.0 }
 0x144   :  { %v101_v6 = vsub.f32 %v95_v2, %v98_v5  ;;  %v117_v7 = vsel %vm114_vm5, %v102_v4, 0.0 }
 0x145   :  { %v123_v11 = vsel %vm122_vm7, %v117_v7, 0.0 }
 0x146   :  { %v120_v9 = vsel %vm118_vm6, %v101_v6, 0.0 }
 0x147   :  { %v121_v10 = vadd.f32 %v120_v9, %v119_v8 }
 0x149   :  { %v124_v12 = vadd.f32 %v123_v11, %v121_v10 }
 0x14b   :  { %125 = vadd.xlane.f32.xlu1 %v124_v12 }
 0x1d4   :  { %v126_v13 = vpop.xlane.xlu1 %125 }
 0x1d5   :  { %v127_v14 = vrot.slane %v126_v13, 4 }
 0x1d7   :  { %v128_v15 = vadd.f32 %v127_v14, %v126_v13 }
 0x1d9   :  { %v129_v16 = vrot.slane %v128_v15, 2 }
 0x1db   :  { %v130_v17 = vadd.f32 %v129_v16, %v128_v15 }
 0x1dd   :  { %v131_v18 = vrot.slane %v130_v17, 1 }
 0x1df   :  { %v132_v19 = vadd.f32 %v131_v18, %v130_v17 }
 0x1e1   :  { %150 = vpush %v132_v19 }
 0x212   :  { %s151_s21 = spop %150 }
 0x213   :  { %v134_v20 = vstv %s151_s21 }
 0x214   :  { %135 = vst [vmem:[#allocation2] sm:$0xff] %v134_v20 }
 0x215   :  { %179 = shalt.err (!%p176_p4)
}
 0x216   :  { %145 = dma.vmem_to_hbm [thread:$0]  %s143_s20, 128, %s250_s2, [#allocation3]  }
 0x217   :  { %188 = dma.done.wait [#allocation3], 128  }
 0x218   :  { %189 = vsyncadd [#allocation3], 4294967168 }
 0x219   :  { %149 = vsyncpa [#allocation3], 1 }

</bundles_post_ra>
